<compile_context>
chip_gen: v7x
topology: tpu7x:2x2x1
jax: 0.10.0
libtpu: 0.0.40
codegen_flags: <defaults>
</compile_context>

<pallas_src>
import functools

import jax
import jax.numpy as jnp
from jax.experimental import pallas as pl
from jax.experimental.pallas import tpu as pltpu

GAMMA = 1.5
ALPHA = 1.0
SIZE_AVERAGE = True


def _focal_pow(x):
    # x ** GAMMA. jnp.power with a float exponent lowers to exp(gamma*log(x))
    # (2 EUP ops); for gamma == 1.5 use x * sqrt(x) (1 EUP op).
    if GAMMA == 1.5:
        return x * jnp.sqrt(x)
    return jnp.power(x, GAMMA)


def focal_loss_kernel(labels_ref, logits_ref, out_ref, *, batch, num_labels):
    i = pl.program_id(0)

    x = logits_ref[...]                                   # [TB, L], native dtype
    tb = x.shape[0]

    labels = labels_ref[...]                               # [TB, 1] int32
    col = jax.lax.broadcasted_iota(jnp.int32, x.shape, 1)
    onehot = col == labels                                  # [TB, L] bool, reused

    # One dense traversal in the native dtype: row max (softmax stabilizer) and
    # the label-column gather (exact: a single nonzero element per row).
    m = jnp.max(x, axis=-1, keepdims=True)                  # [TB, 1]
    x_lab = jnp.sum(jnp.where(onehot, x, jnp.zeros_like(x)),
                    axis=-1, keepdims=True)                 # [TB, 1]

    # Softmax denominator: the only dense f32 work (exp is fused with the sub /
    # cast / row-sum, so no standalone f32 copy of the tile is kept live).
    e_sum = jnp.sum(jnp.exp((x - m).astype(jnp.float32)), axis=-1, keepdims=True)
    lse = jnp.log(e_sum) + m.astype(jnp.float32)            # [TB, 1]

    pt = x_lab.astype(jnp.float32) - lse                     # log p(label) <= 0
    sub_pt = 1.0 - pt                                         # >= 1
    fl_row = -ALPHA * _focal_pow(sub_pt) * pt                 # [TB, 1]

    # Mask (a) padded rows of a ragged last tile and (b) out-of-range labels
    # (reference one_hot yields an all-zero row => zero contribution).
    row = jax.lax.broadcasted_iota(jnp.int32, (tb, 1), 0)
    valid_row = (i * tb + row) < batch
    valid_lab = (labels >= 0) & (labels < num_labels)
    fl_row = jnp.where(valid_row & valid_lab, fl_row, 0.0)

    partial = jnp.sum(fl_row)                                 # scalar f32

    # Per-tile lane-dense (8,128) output slab: partial at [0,0], zeros elsewhere.
    r = jax.lax.broadcasted_iota(jnp.int32, (8, 128), 0)
    c = jax.lax.broadcasted_iota(jnp.int32, (8, 128), 1)
    out_ref[...] = jnp.where((r == 0) & (c == 0), partial, 0.0)


def _vmem_capacity_bytes():
    try:
        cap = getattr(pltpu.get_tpu_info(), "vmem_capacity_bytes", None)
        if cap:
            return int(cap)
    except Exception:
        pass
    return 128 << 20  # v5e/v6e default


def _choose_tile_rows(batch, labels_length, itemsize, vmem_capacity,
                      max_rows=8192):
    """Batch tile: multiple of 8, sized so the *working set* (double-buffered
    input block + ~3x f32 temporaries) stays well within scoped VMEM."""
    per_row = labels_length * (2 * itemsize + 3 * 4)
    budget = min(vmem_capacity // 2, 48 << 20)   # ~32 MiB on v7x, 48 MiB on v5e/v6e
    rows = budget // max(1, per_row)
    rows = (int(max(8, min(max_rows, rows))) // 8) * 8
    b_pad = ((batch + 7) // 8) * 8
    return max(8, min(rows, b_pad))


def focal_loss(logits, labels, tile_rows=None):
    """logits: [B, L] float (f32 or bf16), labels: [B] int -> scalar f32 loss."""
    B, L = logits.shape
    vmem_capacity = _vmem_capacity_bytes()
    tb = tile_rows or _choose_tile_rows(
        B, L, jnp.dtype(logits.dtype).itemsize, vmem_capacity)
    num_tiles = pl.cdiv(B, tb)
    labels_2d = labels.astype(jnp.int32).reshape(B, 1)
    scale = 1.0 / float(B * L) if SIZE_AVERAGE else 1.0

    # Raise the scoped VMEM limit so big tiles compile (defaults: 16 MiB on
    # v5e, 32 MiB on v6e/v7x); cap by generation (~96 MiB v5e/v6e, ~48 MiB v7x).
    vmem_limit = int(min(vmem_capacity * 3 // 4, 96 << 20))

    kernel = functools.partial(focal_loss_kernel, batch=B, num_labels=L)

    partials = pl.pallas_call(
        kernel,
        out_shape=jax.ShapeDtypeStruct((num_tiles * 8, 128), jnp.float32),
        grid=(num_tiles,),
        in_specs=[
            pl.BlockSpec((tb, 1), lambda i: (i, 0)),   # labels tile
            pl.BlockSpec((tb, L), lambda i: (i, 0)),   # logits tile
        ],
        out_specs=pl.BlockSpec((8, 128), lambda i: (i, 0)),  # per-tile slab
        compiler_params=pltpu.CompilerParams(
            dimension_semantics=("parallel",),
            vmem_limit_bytes=vmem_limit),
    )(labels_2d, logits)

    return jnp.sum(partials) * scale


def focal_loss_ref(logits, labels):
    """Plain-JAX reference matching the PyTorch module."""
    B, L = logits.shape
    log_p = jax.nn.log_softmax(logits.astype(jnp.float32), axis=1)
    onehot = jax.nn.one_hot(labels, L, dtype=jnp.float32)
    pt = onehot * log_p
    sub_pt = 1.0 - pt
    fl = -ALPHA * jnp.power(sub_pt, GAMMA) * pt
    return jnp.mean(fl) if SIZE_AVERAGE else jnp.sum(fl)


if __name__ == "__main__":
    B, L = 20, 128  # batch_size, labels_length (B not a multiple of the tile)
    key = jax.random.PRNGKey(0)
    k_logits, k_labels = jax.random.split(key)
    logits = jax.random.normal(k_logits, (B, L), dtype=jnp.float32)
    labels = jax.random.randint(k_labels, (B,), 0, L, dtype=jnp.int32)

    ref = jax.block_until_ready(focal_loss_ref(logits, labels))

    # Small tile forces multiple grid steps + a ragged last tile, exercising
    # the per-tile partial-sum path, the row mask, and the wrapper reduction.
    loss = jax.block_until_ready(focal_loss(logits, labels, tile_rows=8))
    assert jnp.allclose(loss, ref, rtol=1e-5, atol=1e-6), (loss, ref)

    # Also check the default (auto-sized, single-tile here) tiling path.
    loss2 = jax.block_until_ready(focal_loss(logits, labels))
    assert jnp.allclose(loss2, ref, rtol=1e-5, atol=1e-6), (loss2, ref)

    print("KERNEL_OK")
</pallas_src>

<mosaic_0001>
module attributes {stable_mosaic.version = 11 : i64} {
  func.func @focal_loss_kernel(%arg0: i32, %arg1: memref<8x1xi32, #tpu.memory_space<vmem>>, %arg2: memref<8x128xf32, #tpu.memory_space<vmem>>, %arg3: memref<8x128xf32, #tpu.memory_space<vmem>>) attributes {dimension_semantics = [#tpu.dimension_semantics<parallel>], iteration_bounds = array<i64: 3>, scalar_prefetch = 0 : i64, scratch_operands = 0 : i64, tpu.core_type = #tpu.core_type<tc>, window_params = [{transform_indices = @transform_0, window_bounds = array<i64: 8, 1>}, {transform_indices = @transform_1, window_bounds = array<i64: 8, 128>}, {transform_indices = @transform_2, window_bounds = array<i64: 8, 128>}]} {
    %c0 = arith.constant 0 : index
    %c0_0 = arith.constant 0 : index
    %0 = vector.load %arg2[%c0, %c0_0] : memref<8x128xf32, #tpu.memory_space<vmem>>, vector<8x128xf32>
    %c0_1 = arith.constant 0 : index
    %c0_2 = arith.constant 0 : index
    %1 = vector.load %arg1[%c0_1, %c0_2] : memref<8x1xi32, #tpu.memory_space<vmem>>, vector<8x1xi32>
    %2 = tpu.iota {dimensions = array<i32: 1>} : vector<8x128xi32>
    %3 = vector.broadcast %1 : vector<8x1xi32> to vector<8x128xi32>
    %4 = arith.cmpi eq, %2, %3 : vector<8x128xi32>
    %cst = arith.constant dense<0xFF800000> : vector<8xf32>
    %5 = vector.multi_reduction <maximumf>, %0, %cst [1] : vector<8x128xf32> to vector<8xf32>
    %6 = vector.shape_cast %5 : vector<8xf32> to vector<8x1xf32>
    %cst_3 = arith.constant 0.000000e+00 : f32
    %7 = vector.broadcast %cst_3 : f32 to vector<8x128xf32>
    %8 = arith.select %4, %0, %7 : vector<8x128xi1>, vector<8x128xf32>
    %cst_4 = arith.constant dense<0.000000e+00> : vector<8xf32>
    %9 = vector.multi_reduction <add>, %8, %cst_4 [1] : vector<8x128xf32> to vector<8xf32>
    %10 = vector.shape_cast %9 : vector<8xf32> to vector<8x1xf32>
    %11 = vector.broadcast %6 : vector<8x1xf32> to vector<8x128xf32>
    %12 = arith.subf %0, %11 : vector<8x128xf32>
    %13 = math.exp %12 : vector<8x128xf32>
    %cst_5 = arith.constant dense<0.000000e+00> : vector<8xf32>
    %14 = vector.multi_reduction <add>, %13, %cst_5 [1] : vector<8x128xf32> to vector<8xf32>
    %15 = vector.shape_cast %14 : vector<8xf32> to vector<8x1xf32>
    %16 = math.log %15 : vector<8x1xf32>
    %17 = arith.addf %16, %6 : vector<8x1xf32>
    %18 = arith.subf %10, %17 : vector<8x1xf32>
    %cst_6 = arith.constant 1.000000e+00 : f32
    %19 = vector.broadcast %cst_6 : f32 to vector<8x1xf32>
    %20 = arith.subf %19, %18 : vector<8x1xf32>
    %21 = math.sqrt %20 : vector<8x1xf32>
    %22 = arith.mulf %20, %21 : vector<8x1xf32>
    %cst_7 = arith.constant -1.000000e+00 : f32
    %23 = vector.broadcast %cst_7 : f32 to vector<8x1xf32>
    %24 = arith.mulf %23, %22 : vector<8x1xf32>
    %25 = arith.mulf %24, %18 : vector<8x1xf32>
    %26 = tpu.iota {dimensions = array<i32: 0>} : vector<8x1xi32>
    %c8_i32 = arith.constant 8 : i32
    %27 = arith.muli %arg0, %c8_i32 : i32
    %28 = vector.broadcast %27 : i32 to vector<8x1xi32>
    %29 = arith.addi %28, %26 : vector<8x1xi32>
    %c20_i32 = arith.constant 20 : i32
    %30 = vector.broadcast %c20_i32 : i32 to vector<8x1xi32>
    %31 = arith.cmpi slt, %29, %30 : vector<8x1xi32>
    %c0_i32 = arith.constant 0 : i32
    %32 = vector.broadcast %c0_i32 : i32 to vector<8x1xi32>
    %33 = arith.cmpi sge, %1, %32 : vector<8x1xi32>
    %c128_i32 = arith.constant 128 : i32
    %34 = vector.broadcast %c128_i32 : i32 to vector<8x1xi32>
    %35 = arith.cmpi slt, %1, %34 : vector<8x1xi32>
    %36 = arith.andi %33, %35 : vector<8x1xi1>
    %37 = arith.andi %31, %36 : vector<8x1xi1>
    %cst_8 = arith.constant 0.000000e+00 : f32
    %38 = vector.broadcast %cst_8 : f32 to vector<8x1xf32>
    %39 = arith.select %37, %25, %38 : vector<8x1xi1>, vector<8x1xf32>
    %40 = vector.shape_cast %39 : vector<8x1xf32> to vector<1x8x1xf32>
    %cst_9 = arith.constant dense<0.000000e+00> : vector<1xf32>
    %41 = vector.multi_reduction <add>, %40, %cst_9 [1, 2] : vector<1x8x1xf32> to vector<1xf32>
    %42 = vector.shape_cast %41 : vector<1xf32> to vector<1x1x1xf32>
    %43 = vector.extract %42[0, 0, 0] : f32 from vector<1x1x1xf32>
    %44 = tpu.iota {dimensions = array<i32: 0>} : vector<8x128xi32>
    %45 = tpu.iota {dimensions = array<i32: 1>} : vector<8x128xi32>
    %c0_i32_10 = arith.constant 0 : i32
    %46 = vector.broadcast %c0_i32_10 : i32 to vector<8x128xi32>
    %47 = arith.cmpi eq, %44, %46 : vector<8x128xi32>
    %c0_i32_11 = arith.constant 0 : i32
    %48 = vector.broadcast %c0_i32_11 : i32 to vector<8x128xi32>
    %49 = arith.cmpi eq, %45, %48 : vector<8x128xi32>
    %50 = arith.andi %47, %49 : vector<8x128xi1>
    %cst_12 = arith.constant 0.000000e+00 : f32
    %51 = vector.broadcast %43 : f32 to vector<8x128xf32>
    %52 = vector.broadcast %cst_12 : f32 to vector<8x128xf32>
    %53 = arith.select %50, %51, %52 : vector<8x128xi1>, vector<8x128xf32>
    %c0_13 = arith.constant 0 : index
    %c0_14 = arith.constant 0 : index
    %54 = vector.load %arg3[%c0_13, %c0_14] : memref<8x128xf32, #tpu.memory_space<vmem>>, vector<8x128xf32>
    tpu.vector_store %arg3[%c0_13, %c0_14], %53 {strides = array<i32>} : memref<8x128xf32, #tpu.memory_space<vmem>>, vector<8x128xf32>,
    return
  }
  func.func @transform_0(%arg0: i32) -> (i32, i32) {
    %c0_i32 = arith.constant 0 : i32
    %c0_i32_0 = arith.constant 0 : i32
    return %arg0, %c0_i32 : i32, i32
  }
  func.func @transform_1(%arg0: i32) -> (i32, i32) {
    %c0_i32 = arith.constant 0 : i32
    %c0_i32_0 = arith.constant 0 : i32
    return %arg0, %c0_i32 : i32, i32
  }
  func.func @transform_2(%arg0: i32) -> (i32, i32) {
    %c0_i32 = arith.constant 0 : i32
    %c0_i32_0 = arith.constant 0 : i32
    return %arg0, %c0_i32 : i32, i32
  }
}

</mosaic_0001>

<bundles_post_ra>
// kernel: tpu_custom_call.1
= control target key start
LH: loop header
LB: loop body
LE: loop exit
PB: predicated region body
PF: predicated region fallthrough
CT: control target
= control target key end

     0   :  { %7 = vsyncpa [#allocation3], 0  ;;  %s805_s0 = inlined_call_operand.hbm [shape: s32[20,1], index: 0, kind: input, shape index: {}]   ;;  %s806_s1 = inlined_call_operand.hbm [shape: f32[20,128], index: 1, kind: input, shape index: {}]   ;;  %s807_s2 = inlined_call_operand.hbm [shape: f32[24,128], index: 2, kind: output, shape index: {}]  }
   0x1   :  { %9 = vsyncpa [#allocation3 + $0x1], 0 }
   0x2   :  { %10 = vsyncpa [#allocation6], 0 }
   0x3   :  { %12 = vsyncpa [#allocation6 + $0x1], 0 }
   0x4   :  { %13 = vsyncpa [#allocation4], 0 }
   0x5   :  { %15 = vsyncpa [#allocation4 + $0x1], 0  ;;  %s592_s9 = smov 0   ;;  %s594_s10 = smov 0  }
   0x6   :  { %s596_s11 = smov 0   ;;  %s598_s12 = smov 0  }
   0x7 LB: > { %s613_s13 = sadd.s32 4294967295, %s571_s12   ;;  %s364_s14 = sadd.s32 4294967294, %s571_s12   ;;  %s571_s12 = sphi %s598_s12, %s825_s12   ;;  %s567_s11 = sphi %s596_s11, %s824_s11   ;;  %s563_s10 = sphi %s594_s10, %s823_s10   ;;  %s559_s9 = sphi %s592_s9, %s822_s9  }
   0x8   : > { %s617_s15 = sadd.s32 1, %s571_s12   ;;  %s28_s16 = sadd.s32 1, %s567_s11 }
   0x9   : > { %s25_s17 = ssub.s32 %s571_s12, %s617_s15  ;;  %p35_p0 = scmp.ne.s32.totalorder %s567_s11, %s563_s10 }
   0xa   : > { %p26_p1 = scmp.eq.s32.totalorder %s25_s17, 0  ;;  %p36_p2 = scmp.eq.s32.totalorder %s571_s12, 0 }
   0xb   : > { %p41_p3 = scmp.ne.s32.totalorder %s563_s10, %s559_s9  ;;  %p42_p4 = scmp.eq.s32.totalorder %s613_s13, 0 }
   0xc   : > { %s629_s18 = scalar_select %p26_p1, %s567_s11, %s28_s16  }
   0xd   : > { %p631_p5 = por %p36_p2, %p35_p0  ;;  %p635_p6 = por %p42_p4, %p41_p3 }
   0xe   : > { %p91_p7 = scmp.eq.s32.totalorder %s613_s13, 2  ;;  %p97_p8 = scmp.eq.s32.totalorder %s364_s14, 2 }
   0xf   : > { %s811_s20 = scalar_select %p635_p6, 1, 0 }
  0x10   : > { %p399_p9 = scmp.lt.s32.totalorder %s571_s12, 3  ;;  %p641_p10 = por %p91_p7, %p35_p0 }
  0x11   : > { %p645_p11 = por %p97_p8, %p41_p3  ;;  %s650_s23 = sand.u32 1, %s567_s11  }
  0x12   : > { %s812_s21 = scalar_select %p641_p10, 1, 0 }
  0x13   : > { %s813_s22 = scalar_select %p645_p11, 1, 0 }
  0x14   : > { %s368_s24 = sshll.u32 %s571_s12, 7  ;;  %s367_s25 = sshll.u32 %s650_s23, 3 }
  0x15   : > { %s659_s28 = scalar_lea.hbm %s805_s0, %s368_s24  ;;  %s121_s29 = scalar_lea.vmem [#allocation2], %s367_s25 }
  0x16   : > { %s128_s30 = sshll.u32 %s121_s29, 4  ;;  %p665_p12 = pnand %p399_p9, %p631_p5  ;;  %s669_s30 = int_to_ptr.vmem [resolvable:$true] %s128_s30 }
  0x17   : > { %s118_s4 = scalar_lea.sflag [#allocation3], %s650_s23  ;;  %s441_s5 = scalar_lea.hbm %s659_s28, 128 }
  0x18   : > { %p442_p1 = scmp.ne.s32.totalorder %s659_s28, %s441_s5  ;;  %p443_p2 = pneg %p665_p12 }
  0x19   : > { %s446_s8 = scalar_lea.hbm %s805_s0, 384  ;;  %p447_p5 = scmp.lt.u32.totalorder %s659_s28, %s805_s0 }
  0x1a   : > { %p444_p3 = pnand %p443_p2, %p442_p1  ;;  %p448_p7 = scmp.lt.u32.totalorder %s446_s8, %s441_s5 }
  0x1b   : > { %p450_p9 = scmp.lt.u32.totalorder %s441_s5, %s659_s28 }
  0x1c   : > { %p445_p4 = pneg %p444_p3  ;;  %p449_p8 = por %p448_p7, %p447_p5 }
  0x1e   : > { %p451_p13 = por %p450_p9, %p449_p8 }
  0x20   : > { %p452_p0 = pnand %p451_p13, %p445_p4 }
  0x22   : > { %455 = shalt.err (!%p452_p0)
}
  0x23   : > { %s456_s17 = scalar_lea.vmem %s669_s30, 128  ;;  %s573_s19 = smov [#allocation2]  }
  0x24   : > { %p457_p1 = scmp.ne.s32.totalorder %s669_s30, %s456_s17  ;;  %s461_s26 = sshll.u32 %s573_s19, 4  ;;  %s462_s26 = int_to_ptr.vmem [resolvable:$false] %s461_s26 }
  0x25   : > { %s463_s27 = scalar_lea.vmem %s462_s26, 256  ;;  %p464_p10 = scmp.lt.s32.totalorder %s669_s30, %s462_s26 }
  0x26   : > { %p459_p3 = pnand %p457_p1, %p443_p2  ;;  %p465_p5 = scmp.lt.s32.totalorder %s463_s27, %s456_s17 }
  0x28   : > { %p460_p11 = pneg %p459_p3  ;;  %p466_p7 = por %p465_p5, %p464_p10 }
  0x2a   : > { %p467_p8 = pnand %p466_p7, %p460_p11 }
  0x2c   : > { %470 = shalt.err (!%p467_p8)
}
  0x2d   : > { %391 = dma.hbm_to_vmem [thread:$0]  (!%p665_p12), %s659_s28, 128, %s669_s30, %s118_s4  }
  0x2e   : > { %p815_p13 = scmp.lt.s32.totalorder %s571_s12, 4  ;;  %p816_p0 = scmp.ge.s32.totalorder %s571_s12, 1 }
  0x2f   : > { %s712_s7 = scalar_lea.hbm %s806_s1, %s368_s24  ;;  %s139_s8 = scalar_lea.vmem [#allocation5], %s367_s25 }
  0x30   : > { %p703_p4 = pnand %p816_p0, %p815_p13  ;;  %s146_s14 = sshll.u32 %s139_s8, 4  ;;  %s147_s14 = int_to_ptr.vmem [resolvable:$true] %s146_s14 }
  0x31   : > { %s136_s28 = scalar_lea.sflag [#allocation6], %s650_s23  ;;  %s471_s30 = scalar_lea.hbm %s712_s7, 128 }
  0x32   : > { %s817_s29 = scalar_select %p703_p4, 1, 0 }
  0x33   : > { %p472_p10 = scmp.ne.s32.totalorder %s712_s7, %s471_s30  ;;  %s476_s24 = scalar_lea.hbm %s806_s1, 384 }
  0x34   : > { %p477_p1 = scmp.lt.u32.totalorder %s712_s7, %s806_s1  ;;  %p478_p3 = scmp.lt.u32.totalorder %s476_s24, %s471_s30 }
  0x35   : > { %p474_p11 = pnand %p472_p10, %p443_p2  ;;  %p480_p7 = scmp.lt.u32.totalorder %s471_s30, %s712_s7 }
  0x36   : > { %p479_p5 = por %p478_p3, %p477_p1 }
  0x37   : > { %p475_p9 = pneg %p474_p11 }
  0x38   : > { %p481_p8 = por %p480_p7, %p479_p5 }
  0x3a   : > { %p482_p13 = pnand %p481_p8, %p475_p9 }
  0x3c   : > { %485 = shalt.err (!%p482_p13)
}
  0x3d   : > { %s486_s23 = scalar_lea.vmem %s147_s14, 128  ;;  %s574_s25 = smov [#allocation5]  }
  0x3e   : > { %p487_p0 = scmp.ne.s32.totalorder %s147_s14, %s486_s23  ;;  %s491_s26 = sshll.u32 %s574_s25, 4  ;;  %s492_s26 = int_to_ptr.vmem [resolvable:$false] %s491_s26 }
  0x3f   : > { %s493_s27 = scalar_lea.vmem %s492_s26, 256  ;;  %p494_p6 = scmp.lt.s32.totalorder %s147_s14, %s492_s26 }
  0x40   : > { %p489_p10 = pnand %p487_p0, %p443_p2  ;;  %p495_p4 = scmp.lt.s32.totalorder %s493_s27, %s486_s23 }
  0x42   : > { %p490_p11 = pneg %p489_p10  ;;  %p496_p1 = por %p495_p4, %p494_p6 }
  0x44   : > { %p497_p3 = pnand %p496_p1, %p490_p11 }
  0x46   : > { %500 = shalt.err (!%p497_p3)
}
  0x47   : > { %394 = dma.hbm_to_vmem [thread:$0]  (!%p665_p12), %s712_s7, 128, %s147_s14, %s136_s28  }
  0x48   : > { %p818_p9 = scmp.ne.s32.totalorder %s817_s29, 0 }
  0x49   : > { %s739_s5 = sand.u32 (!%p818_p9), 1, %s563_s10   ;;  %p819_p6 = scmp.ne.s32.totalorder (!%p818_p9), %s811_s20, 0 }
  0x4a   : > { %155 = sbr.rel (%p818_p9) target bundleno = 647 (0x287), region = 28  ;;  %s742_s6 = sshll.u32 (!%p818_p9), %s739_s5, 3 }
  0x4b   : > { %s158_s8 = scalar_lea.sflag (!%p818_p9), [#allocation3], %s739_s5  ;;  %s161_s30 = scalar_lea.vmem (!%p818_p9), [#allocation2], %s742_s6 }
  0x51   : > { %546 = dma.done.wait (%p819_p6), %s158_s8, 128  }
  0x52   : > { %548 = vsyncadd (%p819_p6), %s158_s8, 4294967168  ;;  %s167_s3 = scalar_lea.sflag [#allocation6], %s739_s5  ;;  %s170_s29 = scalar_lea.vmem [#allocation5], %s742_s6 }
  0x53   : > { %550 = dma.done.wait (%p819_p6), %s167_s3, 128  }
  0x54   : > { %552 = vsyncadd (%p819_p6), %s167_s3, 4294967168  ;;  %v575_v0 = vmov 0   ;;  %v196_v1 = vld [vmem:[%s170_s29] sm:$0xff]  ;;  %v197_v2 = vld [vmem:[%s161_s30] sm:$0xff]  ;;  %v198_v6 = vlaneseq  ;;  %s375_s20 = sshll.u32 %s613_s13, 3  ;;  %vm240_vm8 = vcmask 7168  }
  0x55   : > { %434 = vset.pattern.permute.xlu0 %v575_v0  ;;  %v232_v19 = vstv %s375_s20  ;;  %vm235_vm1 = vcmp.ge.s32.totalorder %v197_v2, 0  ;;  %vm236_vm2 = vcmp.lt.s32.totalorder %v197_v2, 128  ;;  %s377_s7 = sshll.u32 %s613_s13, 7  ;;  %s195_s14 = scalar_lea.vmem [#allocation7], %s742_s6 }
  0x56   : > { %204 = vmax.xlane.f32.xlu0 %v196_v1  ;;  %v199_v7 = vand.u32 127, %v198_v6  ;;  %v230_v18 = vshrl.u32 %v198_v6, 7  ;;  %vm237_vm6 = vmand %vm235_vm1, %vm236_vm2  ;;  %s271_s28 = sshll.u32 %s195_s14, 4  ;;  %s762_s17 = scalar_lea.hbm %s807_s2, %s377_s7  ;;  %s764_s28 = int_to_ptr.vmem [resolvable:$true] %s271_s28 }
  0x57   : > { %s258_s19 = scalar_lea.sflag [#allocation4], %s739_s5  ;;  %s501_s23 = scalar_lea.vmem %s764_s28, 128 }
  0x58   : > { %v233_v22 = vadd.s32 %v232_v19, %v230_v18  ;;  %vm251_vm9 = vcmp.eq.s32.totalorder %v230_v18, 0  ;;  %vm252_vm10 = vcmp.eq.s32.totalorder %v199_v7, 0  ;;  %p502_p12 = scmp.ne.s32.totalorder %s764_s28, %s501_s23  ;;  %p820_p2 = scmp.ne.s32.totalorder %s812_s21, 0 }
  0x59   : > { %vm253_vm11 = vmand %vm251_vm9, %vm252_vm10  ;;  %s576_s13 = smov [#allocation7]  }
  0x5a   : > { %vm234_vm5 = vcmp.lt.s32.totalorder %v233_v22, 20  ;;  %p503_p4 = pnand %p502_p12, %p820_p2  ;;  %s505_s25 = sshll.u32 %s576_s13, 4  ;;  %s506_s25 = int_to_ptr.vmem [resolvable:$false] %s505_s25 }
  0x5b   : > { %vm238_vm7 = vmand %vm234_vm5, %vm237_vm6  ;;  %s507_s26 = scalar_lea.vmem %s506_s25, 256  ;;  %p508_p7 = scmp.lt.s32.totalorder %s764_s28, %s506_s25 }
  0x5c   : > { %p504_p5 = pneg %p503_p4  ;;  %p509_p8 = scmp.lt.s32.totalorder %s507_s26, %s501_s23 }
  0x5e   : > { %p510_p13 = por %p509_p8, %p508_p7 }
  0x60   : > { %p511_p0 = pnand %p510_p13, %p504_p5 }
  0x6c   : > { %201 = vperm.xlu0 %434, %v197_v2  }
  0xe3   : > { %v205_v3 = vpop.xlane.xlu0 %204 }
  0xe4   : > { %v209_v4 = vsub.f32 %v196_v1, %v205_v3 }
  0xe6   : > { %v210_v5 = vmul.f32 1.442695, %v209_v4 }
  0xe8   : > { %435 = vpow2.f32 %v210_v5 }
  0xeb   : > { %v202_v8 = vpop.permute.xlu0 %201 }
  0xec   : > { %vm203_vm0 = vcmp.eq.s32.totalorder %v199_v7, %v202_v8 }
  0xed   : > { %v206_v10 = vsel %vm203_vm0, %v196_v1, 0.0 }
  0xf2   : > { %v436_v9 = vpop.eup %435 }
  0xf3   : > { %212 = vadd.xlane.f32.xlu1 %v436_v9 }
  0xf7   : > { %207 = vadd.xlane.f32.xlu1 %v206_v10 }
 0x180   : > { %v213_v11 = vpop.xlane.xlu1 %212 }
 0x181   : > { %437 = vlog2.f32 %v213_v11 }
 0x184   : > { %v208_v14 = vpop.xlane.xlu1 %207 }
 0x18b   : > { %v438_v12 = vpop.eup %437 }
 0x18c   : > { %v215_v13 = vmul.f32 0.6931472, %v438_v12 }
 0x18e   : > { %v216_v15 = vadd.f32 %v215_v13, %v205_v3 }
 0x190   : > { %v217_v16 = vsub.f32 %v208_v14, %v216_v15 }
 0x192   : > { %v218_v17 = vsub.f32 1.0, %v217_v16 }
 0x194   : > { %439 = vrsqrt.f32 %v218_v17  ;;  %vm221_vm3 = vcmp.eq.f32.partialorder %v218_v17, inf  ;;  %v224_v23 = vand.u32 2147483648, %v218_v17  ;;  %vm223_vm4 = vcmp.eq.f32.partialorder %v218_v17, 0.0 }
 0x19e   : > { %v440_v20 = vpop.eup %439 }
 0x19f   : > { %v220_v21 = vmul.f32 %v440_v20, %v218_v17 }
 0x1a1   : > { %v222_v24 = vsel %vm221_vm3, %v218_v17, %v220_v21 }
 0x1a2   : > { %v225_v25 = vsel %vm223_vm4, %v224_v23, %v222_v24 }
 0x1a3   : > { %v226_v26 = vmul.f32 %v225_v25, %v218_v17 }
 0x1a5   : > { %v227_v27 = vmul.f32 -1.0, %v226_v26 }
 0x1a7   : > { %v228_v28 = vmul.f32 %v227_v27, %v217_v16 }
 0x1a9   : > { %v239_v29 = vsel %vm238_vm7, %v228_v28, 0.0 }
 0x1aa   : > { %v241_v30 = vsel %vm240_vm8, %v239_v29, 0.0 }
 0x1ab   : > { %242 = vadd.xlane.f32.xlu1 %v241_v30 }
 0x238   : > { %v243_v31 = vpop.xlane.xlu1 %242 }
 0x239   : > { %v244_v32 = vrot.slane %v243_v31, 4 }
 0x23b   : > { %v245_v33 = vadd.f32 %v244_v32, %v243_v31 }
 0x23d   : > { %v246_v34 = vrot.slane %v245_v33, 2 }
 0x23f   : > { %v247_v35 = vadd.f32 %v246_v34, %v245_v33 }
 0x241   : > { %v248_v36 = vrot.slane %v247_v35, 1 }
 0x243   : > { %v249_v37 = vadd.f32 %v248_v36, %v247_v35 }
 0x245   : > { %380 = vpush %v249_v37 }
 0x276   : > { %s381_s4 = spop %380 }
 0x277   : > { %v254_v38 = vstv %s381_s4 }
 0x278   : > { %v255_v39 = vsel %vm253_vm11, %v254_v38, 0.0 }
 0x279   : > { %256 = vst [vmem:[%s195_s14] sm:$0xff] %v255_v39 }
 0x27a   : > { %514 = shalt.err (!%p511_p0)
}
 0x27b   : > { %s515_s27 = scalar_lea.hbm %s762_s17, 128  ;;  %s519_s8 = scalar_lea.hbm %s807_s2, 384 }
 0x27c   : > { %p516_p10 = scmp.ne.s32.totalorder %s762_s17, %s515_s27  ;;  %p520_p3 = scmp.lt.u32.totalorder %s762_s17, %s807_s2 }
 0x27d   : > { %p521_p9 = scmp.lt.u32.totalorder %s519_s8, %s515_s27  ;;  %p523_p12 = scmp.lt.u32.totalorder %s515_s27, %s762_s17 }
 0x27e   : > { %p517_p11 = pnand %p516_p10, %p820_p2 }
 0x27f   : > { %p522_p6 = por %p521_p9, %p520_p3 }
 0x280   : > { %p518_p1 = pneg %p517_p11 }
 0x281   : > { %p524_p4 = por %p523_p12, %p522_p6 }
 0x283   : > { %p525_p5 = pnand %p524_p4, %p518_p1 }
 0x285   : > { %528 = shalt.err (!%p525_p5)
}
 0x286   : > { %386 = dma.vmem_to_hbm [thread:$0]  (%p820_p2), %s764_s28, 128, %s762_s17, %s258_s19  }
 0x287 PF: > { %p400_p7 = scmp.ge.s32.totalorder %s571_s12, 2  ;;  %s283_s29 = sand.u32 1, %s559_s9  }
 0x288   : > { %p821_p8 = scmp.ne.s32.totalorder %s813_s22, 0  ;;  %s284_s20 = scalar_lea.sflag [#allocation4], %s283_s29 }
 0x28a   : > { %p396_p13 = pnand %p400_p7, %p821_p8 }
 0x28c   : > { %554 = dma.done.wait (!%p396_p13), %s284_s20, 128  }
 0x28d   : > { %556 = vsyncadd (!%p396_p13), %s284_s20, 4294967168  ;;  %p18_p0 = scmp.ge.s32.totalorder %s617_s15, 5   ;;  %s822_s9 = smov %s563_s10 }
 0x28e   : > { %s823_s10 = smov %s567_s11  ;;  %s824_s11 = smov %s629_s18 }
 0x28f   : > { %s825_s12 = smov %s617_s15  ;;  %20 = sbr.rel (!%p18_p0) target bundleno = 7 (0x7), region = 86 }
 0x296   :  { %289 = vsyncpa [#allocation3], 1 }
 0x297   :  { %291 = vsyncpa [#allocation3 + $0x1], 1 }
 0x298   :  { %292 = vsyncpa [#allocation6], 1 }
 0x299   :  { %294 = vsyncpa [#allocation6 + $0x1], 1 }
 0x29a   :  { %295 = vsyncpa [#allocation4], 1 }
 0x29b   :  { %297 = vsyncpa [#allocation4 + $0x1], 1 }

</bundles_post_ra>
